<compile_context>
chip_gen: v7x
topology: tpu7x:2x2x1
jax: 0.10.0
libtpu: 0.0.40
codegen_flags: <defaults>
</compile_context>

<pallas_src>
import functools

import numpy as np
import jax
import jax.numpy as jnp
from jax.experimental import pallas as pl
from jax.experimental.pallas import tpu as pltpu

LN_EPS = 1e-5  # nn.LayerNorm default


# ----------------------------- Pallas kernels ------------------------------

def _ln_epilogue(y, gamma, beta, hidden):
    """LayerNorm over the first `hidden` columns of a zero-padded (tm, Npad) tile."""
    inv_h = 1.0 / float(hidden)
    # Padded columns of y are exactly zero, so sum(y) == sum over real columns.
    mean = jnp.sum(y, axis=-1, keepdims=True) * inv_h
    col = jax.lax.broadcasted_iota(jnp.int32, y.shape, 1)
    cent = jnp.where(col < hidden, y - mean, 0.0)
    var = jnp.sum(cent * cent, axis=-1, keepdims=True) * inv_h
    yn = cent * jax.lax.rsqrt(var + LN_EPS)      # rsqrt -> EUP slot
    return yn * gamma + beta                     # padded cols: 0*0 + 0 = 0


def _proj_ln_kernel(x_ref, w_ref, b_ref, g_ref, bt_ref, o_ref, *, hidden):
    # y = LayerNorm(patches @ W_proj + b_proj)
    y = jnp.dot(x_ref[...], w_ref[...], preferred_element_type=jnp.float32)
    y = y + b_ref[...]
    o_ref[...] = _ln_epilogue(y, g_ref[...], bt_ref[...], hidden).astype(o_ref.dtype)


def _proj_pos_ln_kernel(x_ref, w_ref, penc_ref, wp1_ref, wp2_ref, beff_ref,
                        g_ref, bt_ref, o_ref, *, hidden):
    # emb = patches @ W_proj                              (bf16 MXU, f32 acc)
    # y   = emb @ Wp1 + penc @ Wp2 + b_eff                (fused 1x1 conv)
    # out = LayerNorm(y)
    emb = jnp.dot(x_ref[...], w_ref[...], preferred_element_type=jnp.float32)
    y = jnp.dot(emb, wp1_ref[...], preferred_element_type=jnp.float32)
    y = y + jnp.dot(penc_ref[...], wp2_ref[...], preferred_element_type=jnp.float32)
    y = y + beff_ref[...]
    o_ref[...] = _ln_epilogue(y, g_ref[...], bt_ref[...], hidden).astype(o_ref.dtype)


# ------------------------------- helpers ------------------------------------

def _round_up(x, m):
    return ((x + m - 1) // m) * m


def _pad_cols(a, n):
    return jnp.pad(a, ((0, 0), (0, n - a.shape[1])))


def _pad_block(a, n):
    return jnp.pad(a, ((0, n - a.shape[0]), (0, n - a.shape[1])))


def positional_encoding_2d(x, y, orig_ch, dtype=jnp.float32):
    """Matches PositionalEncoding2D.forward; returns (x, y, orig_ch), no batch dim."""
    channels = int(np.ceil(orig_ch / 4) * 2)
    inv_freq = 1.0 / (10000.0 ** (np.arange(0, channels, 2, dtype=np.float32) / channels))
    inv_freq = jnp.asarray(inv_freq, dtype)
    pos_x = jnp.linspace(-1.0, 1.0, x, dtype=dtype)
    pos_y = jnp.linspace(-1.0, 1.0, y, dtype=dtype)
    sin_inp_x = pos_x[:, None] * inv_freq[None, :]
    sin_inp_y = pos_y[:, None] * inv_freq[None, :]
    emb_x = jnp.concatenate([jnp.sin(sin_inp_x), jnp.cos(sin_inp_x)], axis=-1)[:, None, :]
    emb_y = jnp.concatenate([jnp.sin(sin_inp_y), jnp.cos(sin_inp_y)], axis=-1)[None, :, :]
    part_x = jnp.broadcast_to(emb_x, (x, y, channels))
    part_y = jnp.broadcast_to(emb_y, (x, y, channels))
    emb = jnp.concatenate([part_x, part_y], axis=-1)
    return emb[:, :, :orig_ch]


def _extract_patches(pixel_values, patch_size, stride, pad):
    """(B, C, H, W) -> (B, Ho*Wo, C*k*k) bf16 patches, c-major / kh / kw minor."""
    x = pixel_values.astype(jnp.bfloat16)   # exact copy through the one-hot conv kernel
    patches = jax.lax.conv_general_dilated_patches(
        x, (patch_size, patch_size), (stride, stride),
        [(pad, pad), (pad, pad)],
        dimension_numbers=("NCHW", "OIHW", "NHWC"),
    )
    B, Ho, Wo, K = patches.shape
    return patches.reshape(B, Ho * Wo, K), Ho, Wo


# ------------------------------- forward ------------------------------------

def segformer_overlap_patch_embeddings(pixel_values, params, *, patch_size, stride,
                                       use_pos_encoding=False, tm_max=256):
    """Returns (embeddings (B, H*W, hidden), height, width) like the PyTorch module.

    tm_max: row-tile size; 256 suits v6e/v7x MXU height, use 128-multiples on v5e.
    """
    B, C, H, W = pixel_values.shape
    pad = patch_size // 2
    hidden = params["proj_w"].shape[0]
    K = C * patch_size * patch_size
    n_pad = _round_up(hidden, 128)           # lane-dense output width

    patches, Ho, Wo = _extract_patches(pixel_values, patch_size, stride, pad)
    howo = Ho * Wo

    # Small, one-time weight preparation (zero-padded to the lane-dense width).
    w_proj = params["proj_w"].reshape(hidden, K).T                  # (K, hidden)
    w_proj = _pad_cols(w_proj, n_pad).astype(jnp.bfloat16)          # (K, n_pad) bf16
    gamma = _pad_cols(params["ln_g"].reshape(1, hidden), n_pad)
    beta = _pad_cols(params["ln_b"].reshape(1, hidden), n_pad)
    b_proj = _pad_cols(params["proj_b"].reshape(1, hidden), n_pad)

    # Row tile: full Ho*Wo when small (always a legal block), else 256 (16-aligned).
    tm = howo if howo <= tm_max else tm_max
    grid = (B, pl.cdiv(howo, tm))
    out_shape = jax.ShapeDtypeStruct((B, howo, n_pad), jnp.float32)
    cparams = pltpu.CompilerParams(dimension_semantics=("parallel", "parallel"))

    if use_pos_encoding:
        penc = positional_encoding_2d(Ho, Wo, hidden).reshape(howo, hidden)
        penc = _pad_cols(penc, n_pad)                               # (howo, n_pad) f32
        w_pos = params["pos_w"].reshape(hidden, 2 * hidden).T       # (2*hidden, hidden)
        wp1 = _pad_block(w_pos[:hidden], n_pad)                     # emb part
        wp2 = _pad_block(w_pos[hidden:], n_pad)                     # penc part
        # Fold proj bias through the 1x1 conv:  (emb+b) @ Wp1 = emb@Wp1 + b@Wp1
        b_eff = _pad_cols(params["pos_b"].reshape(1, hidden), n_pad) + b_proj @ wp1

        kernel = functools.partial(_proj_pos_ln_kernel, hidden=hidden)
        out = pl.pallas_call(
            kernel,
            out_shape=out_shape,
            grid=grid,
            in_specs=[
                pl.BlockSpec((None, tm, K), lambda b, i: (b, i, 0)),       # patches
                pl.BlockSpec((K, n_pad), lambda b, i: (0, 0)),             # W_proj
                pl.BlockSpec((tm, n_pad), lambda b, i: (i, 0)),            # penc (no B bcast)
                pl.BlockSpec((n_pad, n_pad), lambda b, i: (0, 0)),         # Wp1
                pl.BlockSpec((n_pad, n_pad), lambda b, i: (0, 0)),         # Wp2
                pl.BlockSpec((1, n_pad), lambda b, i: (0, 0)),             # b_eff
                pl.BlockSpec((1, n_pad), lambda b, i: (0, 0)),             # gamma
                pl.BlockSpec((1, n_pad), lambda b, i: (0, 0)),             # beta
            ],
            out_specs=pl.BlockSpec((None, tm, n_pad), lambda b, i: (b, i, 0)),
            compiler_params=cparams,
        )(patches, w_proj, penc, wp1, wp2, b_eff, gamma, beta)
    else:
        kernel = functools.partial(_proj_ln_kernel, hidden=hidden)
        out = pl.pallas_call(
            kernel,
            out_shape=out_shape,
            grid=grid,
            in_specs=[
                pl.BlockSpec((None, tm, K), lambda b, i: (b, i, 0)),       # patches
                pl.BlockSpec((K, n_pad), lambda b, i: (0, 0)),             # W_proj
                pl.BlockSpec((1, n_pad), lambda b, i: (0, 0)),             # b_proj
                pl.BlockSpec((1, n_pad), lambda b, i: (0, 0)),             # gamma
                pl.BlockSpec((1, n_pad), lambda b, i: (0, 0)),             # beta
            ],
            out_specs=pl.BlockSpec((None, tm, n_pad), lambda b, i: (b, i, 0)),
            compiler_params=cparams,
        )(patches, w_proj, b_proj, gamma, beta)

    out = out[:, :, :hidden].astype(pixel_values.dtype)
    return out, Ho, Wo


# ---------------------------- pure-JAX reference ----------------------------
# Mirrors the PyTorch module with the same dtype strategy as the kernel
# (bf16 pixel values / projection weights, f32 accumulation, f32 epilogue),
# so the comparison validates the kernel math rather than bf16 rounding.

def reference_forward(pixel_values, params, *, patch_size, stride, use_pos_encoding):
    pad = patch_size // 2
    emb = jax.lax.conv_general_dilated(
        pixel_values.astype(jnp.bfloat16), params["proj_w"].astype(jnp.bfloat16),
        (stride, stride), [(pad, pad), (pad, pad)],
        dimension_numbers=("NCHW", "OIHW", "NCHW"),
        preferred_element_type=jnp.float32,
    ) + params["proj_b"][None, :, None, None]
    B, hid, Ho, Wo = emb.shape
    if use_pos_encoding:
        penc = positional_encoding_2d(Ho, Wo, hid)
        penc = jnp.broadcast_to(penc[None], (B, Ho, Wo, hid)).transpose(0, 3, 1, 2)
        cat = jnp.concatenate([emb, penc], axis=1)
        emb = jax.lax.conv_general_dilated(
            cat, params["pos_w"], (1, 1), [(0, 0), (0, 0)],
            dimension_numbers=("NCHW", "OIHW", "NCHW"),
            preferred_element_type=jnp.float32,
        ) + params["pos_b"][None, :, None, None]
    seq = emb.reshape(B, hid, Ho * Wo).transpose(0, 2, 1)
    mean = seq.mean(-1, keepdims=True)
    var = ((seq - mean) ** 2).mean(-1, keepdims=True)
    out = (seq - mean) / jnp.sqrt(var + LN_EPS) * params["ln_g"] + params["ln_b"]
    return out, Ho, Wo


# ---------------------------------- main -------------------------------------

if __name__ == "__main__":
    B, C, H, W = 2, 4, 16, 16
    patch_size, stride, hidden = 7, 4, 32

    key = jax.random.PRNGKey(0)
    k_x, k_w, k_b, k_pw, k_pb = jax.random.split(key, 5)

    pixel_values = jax.random.normal(k_x, (B, C, H, W), jnp.float32)
    params = {
        "proj_w": jax.random.normal(k_w, (hidden, C, patch_size, patch_size), jnp.float32) * 0.02,
        "proj_b": jax.random.normal(k_b, (hidden,), jnp.float32) * 0.02,
        "pos_w": jax.random.normal(k_pw, (hidden, 2 * hidden, 1, 1), jnp.float32) * 0.02,
        "pos_b": jax.random.normal(k_pb, (hidden,), jnp.float32) * 0.02,
        "ln_g": jnp.ones((hidden,), jnp.float32),
        "ln_b": jnp.zeros((hidden,), jnp.float32),
    }

    ok = True
    for use_pos in (False, True):
        out, h, w = segformer_overlap_patch_embeddings(
            pixel_values, params, patch_size=patch_size, stride=stride,
            use_pos_encoding=use_pos)
        out = jax.block_until_ready(out)
        ref, rh, rw = reference_forward(
            pixel_values, params, patch_size=patch_size, stride=stride,
            use_pos_encoding=use_pos)
        ref = jax.block_until_ready(ref)
        if (h, w) != (rh, rw) or not np.allclose(np.asarray(out), np.asarray(ref),
                                                 atol=2e-3, rtol=2e-3):
            ok = False

    print("KERNEL_OK" if ok else "KERNEL_MISMATCH")
</pallas_src>

<mosaic_0001>
module attributes {stable_mosaic.version = 11 : i64} {
  func.func @_proj_ln_kernel(%arg0: i32, %arg1: i32, %arg2: memref<1x16x196xbf16, #tpu.memory_space<vmem>>, %arg3: memref<196x128xbf16, #tpu.memory_space<vmem>>, %arg4: memref<1x128xf32, #tpu.memory_space<vmem>>, %arg5: memref<1x128xf32, #tpu.memory_space<vmem>>, %arg6: memref<1x128xf32, #tpu.memory_space<vmem>>, %arg7: memref<1x16x128xf32, #tpu.memory_space<vmem>>) attributes {dimension_semantics = [#tpu.dimension_semantics<parallel>, #tpu.dimension_semantics<parallel>], iteration_bounds = array<i64: 2, 1>, scalar_prefetch = 0 : i64, scratch_operands = 0 : i64, tpu.core_type = #tpu.core_type<tc>, window_params = [{transform_indices = @transform_0, window_bounds = array<i64: 1, 16, 196>}, {pipeline_mode = #tpu.pipeline_mode<synchronous>, transform_indices = @transform_1, window_bounds = array<i64: 196, 128>}, {pipeline_mode = #tpu.pipeline_mode<synchronous>, transform_indices = @transform_2, window_bounds = array<i64: 1, 128>}, {pipeline_mode = #tpu.pipeline_mode<synchronous>, transform_indices = @transform_3, window_bounds = array<i64: 1, 128>}, {pipeline_mode = #tpu.pipeline_mode<synchronous>, transform_indices = @transform_4, window_bounds = array<i64: 1, 128>}, {transform_indices = @transform_5, window_bounds = array<i64: 1, 16, 128>}]} {
    %c0 = arith.constant 0 : index
    %c0_0 = arith.constant 0 : index
    %c0_1 = arith.constant 0 : index
    %0 = vector.load %arg2[%c0, %c0_0, %c0_1] : memref<1x16x196xbf16, #tpu.memory_space<vmem>>, vector<1x16x196xbf16>
    %1 = vector.shape_cast %0 : vector<1x16x196xbf16> to vector<16x196xbf16>
    %c0_2 = arith.constant 0 : index
    %c0_3 = arith.constant 0 : index
    %2 = vector.load %arg3[%c0_2, %c0_3] : memref<196x128xbf16, #tpu.memory_space<vmem>>, vector<196x128xbf16>
    %cst = arith.constant dense<0.000000e+00> : vector<16x128xf32>
    %3 = tpu.matmul %1, %2, %cst {dimension_numbers = #tpu.dot_dimension_numbers<[1], [0], [0], [1], [0, 0, 1, 1], [], []>} : vector<16x196xbf16>, vector<196x128xbf16>, vector<16x128xf32> -> vector<16x128xf32>
    %c0_4 = arith.constant 0 : index
    %c0_5 = arith.constant 0 : index
    %4 = vector.load %arg4[%c0_4, %c0_5] : memref<1x128xf32, #tpu.memory_space<vmem>>, vector<1x128xf32>
    %5 = vector.broadcast %4 : vector<1x128xf32> to vector<16x128xf32>
    %6 = arith.addf %3, %5 : vector<16x128xf32>
    %c0_6 = arith.constant 0 : index
    %c0_7 = arith.constant 0 : index
    %7 = vector.load %arg5[%c0_6, %c0_7] : memref<1x128xf32, #tpu.memory_space<vmem>>, vector<1x128xf32>
    %c0_8 = arith.constant 0 : index
    %c0_9 = arith.constant 0 : index
    %8 = vector.load %arg6[%c0_8, %c0_9] : memref<1x128xf32, #tpu.memory_space<vmem>>, vector<1x128xf32>
    %cst_10 = arith.constant dense<0.000000e+00> : vector<16xf32>
    %9 = vector.multi_reduction <add>, %6, %cst_10 [1] : vector<16x128xf32> to vector<16xf32>
    %10 = vector.shape_cast %9 : vector<16xf32> to vector<16x1xf32>
    %cst_11 = arith.constant 3.125000e-02 : f32
    %11 = vector.broadcast %cst_11 : f32 to vector<16x1xf32>
    %12 = arith.mulf %10, %11 : vector<16x1xf32>
    %13 = tpu.iota {dimensions = array<i32: 1>} : vector<16x128xi32>
    %c32_i32 = arith.constant 32 : i32
    %14 = vector.broadcast %c32_i32 : i32 to vector<16x128xi32>
    %15 = arith.cmpi slt, %13, %14 : vector<16x128xi32>
    %16 = vector.broadcast %12 : vector<16x1xf32> to vector<16x128xf32>
    %17 = arith.subf %6, %16 : vector<16x128xf32>
    %cst_12 = arith.constant 0.000000e+00 : f32
    %18 = vector.broadcast %cst_12 : f32 to vector<16x128xf32>
    %19 = arith.select %15, %17, %18 : vector<16x128xi1>, vector<16x128xf32>
    %20 = arith.mulf %19, %19 : vector<16x128xf32>
    %cst_13 = arith.constant dense<0.000000e+00> : vector<16xf32>
    %21 = vector.multi_reduction <add>, %20, %cst_13 [1] : vector<16x128xf32> to vector<16xf32>
    %22 = vector.shape_cast %21 : vector<16xf32> to vector<16x1xf32>
    %cst_14 = arith.constant 3.125000e-02 : f32
    %23 = vector.broadcast %cst_14 : f32 to vector<16x1xf32>
    %24 = arith.mulf %22, %23 : vector<16x1xf32>
    %cst_15 = arith.constant 9.99999974E-6 : f32
    %25 = vector.broadcast %cst_15 : f32 to vector<16x1xf32>
    %26 = arith.addf %24, %25 : vector<16x1xf32>
    %27 = math.rsqrt %26 : vector<16x1xf32>
    %28 = vector.broadcast %27 : vector<16x1xf32> to vector<16x128xf32>
    %29 = arith.mulf %19, %28 : vector<16x128xf32>
    %30 = vector.broadcast %7 : vector<1x128xf32> to vector<16x128xf32>
    %31 = arith.mulf %29, %30 : vector<16x128xf32>
    %32 = vector.broadcast %8 : vector<1x128xf32> to vector<16x128xf32>
    %33 = arith.addf %31, %32 : vector<16x128xf32>
    %c0_16 = arith.constant 0 : index
    %c0_17 = arith.constant 0 : index
    %c0_18 = arith.constant 0 : index
    %34 = vector.load %arg7[%c0_16, %c0_17, %c0_18] : memref<1x16x128xf32, #tpu.memory_space<vmem>>, vector<1x16x128xf32>
    %35 = vector.shape_cast %34 : vector<1x16x128xf32> to vector<16x128xf32>
    %36 = vector.shape_cast %33 : vector<16x128xf32> to vector<1x16x128xf32>
    tpu.vector_store %arg7[%c0_16, %c0_17, %c0_18], %36 {strides = array<i32>} : memref<1x16x128xf32, #tpu.memory_space<vmem>>, vector<1x16x128xf32>,
    return
  }
  func.func @transform_0(%arg0: i32, %arg1: i32) -> (i32, i32, i32) {
    %c0_i32 = arith.constant 0 : i32
    %c0_i32_0 = arith.constant 0 : i32
    return %arg0, %arg1, %c0_i32 : i32, i32, i32
  }
  func.func @transform_1(%arg0: i32, %arg1: i32) -> (i32, i32) {
    %c0_i32 = arith.constant 0 : i32
    %c0_i32_0 = arith.constant 0 : i32
    %c0_i32_1 = arith.constant 0 : i32
    return %c0_i32, %c0_i32_0 : i32, i32
  }
  func.func @transform_2(%arg0: i32, %arg1: i32) -> (i32, i32) {
    %c0_i32 = arith.constant 0 : i32
    %c0_i32_0 = arith.constant 0 : i32
    %c0_i32_1 = arith.constant 0 : i32
    return %c0_i32, %c0_i32_0 : i32, i32
  }
  func.func @transform_3(%arg0: i32, %arg1: i32) -> (i32, i32) {
    %c0_i32 = arith.constant 0 : i32
    %c0_i32_0 = arith.constant 0 : i32
    %c0_i32_1 = arith.constant 0 : i32
    return %c0_i32, %c0_i32_0 : i32, i32
  }
  func.func @transform_4(%arg0: i32, %arg1: i32) -> (i32, i32) {
    %c0_i32 = arith.constant 0 : i32
    %c0_i32_0 = arith.constant 0 : i32
    %c0_i32_1 = arith.constant 0 : i32
    return %c0_i32, %c0_i32_0 : i32, i32
  }
  func.func @transform_5(%arg0: i32, %arg1: i32) -> (i32, i32, i32) {
    %c0_i32 = arith.constant 0 : i32
    %c0_i32_0 = arith.constant 0 : i32
    return %arg0, %arg1, %c0_i32 : i32, i32, i32
  }
}

</mosaic_0001>

<bundles_post_ra>
// kernel: tpu_custom_call.1
= control target key start
LH: loop header
LB: loop body
LE: loop exit
PB: predicated region body
PF: predicated region fallthrough
CT: control target
= control target key end

     0   :  { %10 = vsyncpa [#allocation3], 0  ;;  %s1167_s0 = inlined_call_operand.hbm [shape: bf16[2,16,196], index: 0, kind: input, shape index: {}]   ;;  %s1168_s1 = inlined_call_operand.hbm [shape: bf16[196,128], index: 1, kind: input, shape index: {}]   ;;  %s1169_s2 = inlined_call_operand.vmem [shape: f32[1,128], index: 2, kind: input, shape index: {}]   ;;  %s1170_s3 = inlined_call_operand.vmem [shape: f32[1,128], index: 3, kind: input, shape index: {}]   ;;  %s1171_s4 = inlined_call_operand.vmem [shape: f32[1,128], index: 4, kind: input, shape index: {}]   ;;  %s1172_s5 = inlined_call_operand.hbm [shape: f32[2,16,128], index: 5, kind: output, shape index: {}]  }
   0x1   :  { %12 = vsyncpa [#allocation3 + $0x1], 0 }
   0x2   :  { %13 = vsyncpa [#allocation6], 0 }
   0x3   :  { %14 = vsyncpa [#allocation4], 0 }
   0x4   :  { %16 = vsyncpa [#allocation4 + $0x1], 0  ;;  %s931_s18 = smov 0   ;;  %s933_s19 = smov 0  }
   0x5   :  { %s935_s20 = smov 0   ;;  %s937_s21 = smov 0  }
   0x6   :  { %s939_s22 = smov 0   ;;  %s941_s23 = smov 0  }
   0x7 LB: > { %s607_s24 = sadd.s32 4294967295, %s889_s23   ;;  %s608_s25 = sadd.s32 4294967294, %s889_s23   ;;  %s889_s23 = sphi %s941_s23, %s22_s23   ;;  %s885_s22 = sphi %s939_s22, %s1196_s22   ;;  %s881_s21 = sphi %s937_s21, %s1195_s21   ;;  %s877_s20 = sphi %s935_s20, %s1194_s20   ;;  %s873_s19 = sphi %s933_s19, %s1193_s19   ;;  %s869_s18 = sphi %s931_s18, %s1192_s18  }
   0x8   : > { %p56_p0 = scmp.ne.s32.totalorder %s873_s19, %s869_s18  ;;  %p965_p1 = scmp.eq.s32.totalorder %s607_s24, 0 }
   0x9   : > { %p969_p2 = scmp.eq.s32.totalorder %s607_s24, 1  ;;  %p172_p3 = scmp.eq.s32.totalorder %s608_s25, 1 }
   0xa   : > { %s1177_s26 = scalar_select %p965_p1, 1, 0 }
   0xb   : > { %s1178_s27 = scalar_select %p969_p2, 1, 0 }
   0xc   : > { %p975_p4 = por %p965_p1, %p56_p0  ;;  %p609_p5 = scmp.ge.s32.totalorder %s889_s23, 1 }
   0xd   : > { %p980_p6 = por %p172_p3, %p56_p0  ;;  %p179_p7 = scmp.lt.s32.totalorder %s889_s23, 3 }
   0xe   : > { %s1179_s28 = scalar_select %p975_p4, 1, 0 }
   0xf   : > { %s1180_s29 = scalar_select %p980_p6, 1, 0 }
  0x10   : > { %p985_p8 = pnand %p609_p5, %p179_p7  ;;  %s891_s6 = smov [#allocation5]  }
  0x11   : > { %s191_s7 = sshll.u32 %s891_s6, 4  ;;  %s34_s9 = sadd.s32 1, %s885_s22  ;;  %s192_s7 = int_to_ptr.vmem [resolvable:$true] %s191_s7 }
  0x12   : > { %s1181_s30 = scalar_select %p985_p8, 1, 0 }
  0x13   : > { %p653_p9 = pneg %p985_p8  ;;  %s745_s12 = scalar_lea.hbm %s1168_s1, 1600 }
  0x14   : > { %p746_p12 = scmp.ne.s32.totalorder %s1168_s1, %s745_s12  ;;  %p752_p5 = scmp.lt.u32.totalorder %s745_s12, %s1168_s1 }
  0x15   : > { %p994_p11 = pnand %p653_p9, %p965_p1 }
  0x17   : > { %p747_p13 = pneg %p994_p11 }
  0x19   : > { %p748_p0 = pnand %p747_p13, %p746_p12 }
  0x1b   : > { %p749_p3 = pneg %p748_p0 }
  0x1d   : > { %p754_p7 = pnand %p752_p5, %p749_p3 }
  0x1f   : > { %757 = shalt.err (!%p754_p7)
}
  0x20   : > { %s758_s17 = scalar_lea.vmem %s192_s7, 1600  ;;  %p766_p1 = scmp.lt.s32.totalorder %s192_s7, %s192_s7 }
  0x21   : > { %p759_p9 = scmp.ne.s32.totalorder %s192_s7, %s758_s17  ;;  %p767_p4 = scmp.lt.s32.totalorder %s758_s17, %s758_s17 }
  0x23   : > { %p761_p10 = pnand %p759_p9, %p747_p13  ;;  %p768_p8 = por %p767_p4, %p766_p1 }
  0x25   : > { %p762_p6 = pneg %p761_p10 }
  0x27   : > { %p769_p2 = pnand %p768_p8, %p762_p6 }
  0x29   : > { %772 = shalt.err (!%p769_p2)
}
  0x2a   : > { %s892_s24 = smov 64   ;;  %s893_s25 = smov 4  }
  0x2b   : > { %656 = dma.hbm_to_vmem [thread:$0]  (!%p994_p11), %s1168_s1, 1600, %s192_s7, [#allocation6], %s892_s24, %s892_s24, %s893_s25  }
  0x2c   : > { %p36_p1 = scmp.ge.s32.totalorder %s34_s9, 2  ;;  %s43_s11 = sadd.s32 1, %s877_s20 }
  0x2d   : > { %p50_p2 = scmp.ne.s32.totalorder %s877_s20, %s873_s19  ;;  %p51_p4 = scmp.eq.s32.totalorder %s889_s23, 0 }
  0x2e   : > { %s1198_s9 = smov (%p36_p1, %s34_s9), 0  ;;  %p1184_p8 = scmp.ne.s32.totalorder %s1178_s27, 0 }
  0x2f   : > { %p1021_p6 = por %p51_p4, %p50_p2  ;;  %s38_s8 = ssub.s32 %s885_s22, %s1198_s9 }
  0x30   : > { %p1027_p10 = por %p1184_p8, %p50_p2  ;;  %p666_p12 = scmp.lt.s32.totalorder %s889_s23, 2 }
  0x31   : > { %p41_p11 = scmp.eq.s32.totalorder %s38_s8, 0  ;;  %s214_s7 = sand.u32 1, %s877_s20  }
  0x32   : > { %s612_s14 = sshll.u32 %s214_s7, 4  ;;  %s643_s16 = sshll.u32 %s885_s22, 8 }
  0x33   : > { %s1036_s15 = scalar_select %p41_p11, %s877_s20, %s43_s11  }
  0x34   : > { %s1042_s25 = scalar_lea.hbm %s1167_s0, %s643_s16  ;;  %s218_s27 = scalar_lea.vmem [#allocation2], %s612_s14 }
  0x35   : > { %s228_s6 = sshll.u32 %s218_s27, 4  ;;  %p1048_p13 = pnand %p666_p12, %p1021_p6  ;;  %s1044_s6 = int_to_ptr.vmem [resolvable:$true] %s228_s6 }
  0x36   : > { %s1052_s11 = scalar_lea.sflag [#allocation3], %s214_s7  ;;  %s773_s8 = scalar_lea.hbm %s1042_s25, 256 }
  0x37   : > { %p774_p0 = scmp.ne.s32.totalorder %s1042_s25, %s773_s8  ;;  %p775_p3 = pneg %p1048_p13 }
  0x38   : > { %s778_s12 = scalar_lea.hbm %s1167_s0, 512  ;;  %p779_p9 = scmp.lt.u32.totalorder %s1042_s25, %s1167_s0 }
  0x39   : > { %p776_p5 = pnand %p775_p3, %p774_p0  ;;  %p780_p1 = scmp.lt.u32.totalorder %s778_s12, %s773_s8 }
  0x3a   : > { %p782_p4 = scmp.lt.u32.totalorder %s773_s8, %s1042_s25 }
  0x3b   : > { %p777_p7 = pneg %p776_p5  ;;  %p781_p2 = por %p780_p1, %p779_p9 }
  0x3d   : > { %p783_p6 = por %p782_p4, %p781_p2 }
  0x3f   : > { %p784_p8 = pnand %p783_p6, %p777_p7 }
  0x41   : > { %787 = shalt.err (!%p784_p8)
}
  0x42   : > { %s788_s7 = scalar_lea.vmem %s1044_s6, 256  ;;  %s894_s27 = smov [#allocation2]  }
  0x43   : > { %p789_p12 = scmp.ne.s32.totalorder %s1044_s6, %s788_s7  ;;  %s793_s14 = sshll.u32 %s894_s27, 4  ;;  %s794_s14 = int_to_ptr.vmem [resolvable:$false] %s793_s14 }
  0x44   : > { %s795_s16 = scalar_lea.vmem %s794_s14, 512  ;;  %p796_p5 = scmp.lt.s32.totalorder %s1044_s6, %s794_s14 }
  0x45   : > { %p791_p11 = pnand %p789_p12, %p775_p3  ;;  %p797_p9 = scmp.lt.s32.totalorder %s795_s16, %s788_s7 }
  0x47   : > { %p792_p0 = pneg %p791_p11  ;;  %p798_p1 = por %p797_p9, %p796_p5 }
  0x49   : > { %p799_p2 = pnand %p798_p1, %p792_p0 }
  0x4b   : > { %802 = shalt.err (!%p799_p2)
}
  0x4c   : > { %s895_s8 = smov 128   ;;  %s896_s12 = smov 8  }
  0x4d   : > { %660 = dma.hbm_to_vmem [thread:$0]  (!%p1048_p13), %s1042_s25, 256, %s1044_s6, %s1052_s11, %s895_s8, %s895_s8, %s896_s12  }
  0x4e   : > { %p1187_p3 = scmp.ne.s32.totalorder %s1181_s30, 0 }
  0x4f   : > { %s1083_s17 = sand.u32 (!%p1187_p3), 1, %s873_s19   ;;  %p1188_p7 = scmp.ne.s32.totalorder (!%p1187_p3), %s1179_s28, 0 }
  0x50   : > { %240 = sbr.rel (%p1187_p3) target bundleno = 689 (0x2b1), region = 40  ;;  %s616_s24 = sshll.u32 (!%p1187_p3), %s1083_s17, 4 }
  0x51   : > { %s243_s7 = scalar_lea.sflag (!%p1187_p3), [#allocation3], %s1083_s17  ;;  %s1089_s27 = scalar_lea.vmem (!%p1187_p3), [#allocation2], %s616_s24 }
  0x57   : > { %856 = dma.done.wait (%p1188_p7), %s243_s7, 256  }
  0x58   : > { %858 = vsyncadd (%p1188_p7), %s243_s7, 4294967040  ;;  %p1189_p13 = scmp.ne.s32.totalorder %s1177_s26, 0 }
  0x5a   : > { %860 = dma.done.wait (%p1189_p13), [#allocation6], 1600  }
  0x5b   : > { %862 = vsyncadd (%p1189_p13), [#allocation6], 4294965696  ;;  %v897_v0 = vmov 0   ;;  %v725_v1 = vld [vmem:[#allocation5] sm:$0xff]   ;;  %v726_v2 = vld [vmem:[#allocation5 + $0x8] sm:$0xff]   ;;  %vm398_vm0 = vcmask 556032   ;;  %v455_v24 = vlaneseq }
  0x5c   : > { %406 = vmatprep.subr.bf16.mxu0 %v897_v0  ;;  %v727_v3 = vld [vmem:[#allocation5 + $0x10] sm:$0xff]   ;;  %v728_v4 = vld [vmem:[#allocation5 + $0x18] sm:$0xff]   ;;  %v729_v6 = vld [vmem:[#allocation5 + $0x20] sm:$0xff]   ;;  %vm402_vm1 = vcmask 1041408   ;;  %s644_s11 = sshll.u32 %s881_s21, 8  ;;  %s276_s14 = scalar_lea.vmem [#allocation7], %s616_s24 }
  0x5d   : > { %407 = vmatpush1.bf16.msra.mxu0 %v725_v1  ;;  %v740_v5 = vld [vmem:[%s1089_s27 + $0x4] ss:$8 sps:$4 sm:$0xff]   ;;  %v737_v14 = vld [vmem:[#allocation5 + $0x60] ss:$0 sps:$4 sm:$0x33]   ;;  %v456_v25 = vand.u32 127, %v455_v24  ;;  %s1116_s7 = scalar_lea.hbm %s1172_s5, %s644_s11 }
  0x5e   : > { %408 = vmatprep.subr.bf16.mxu0 %v897_v0  ;;  %635 = vmatprep.mubr.msk.bf16.mxu0 %vm398_vm0, %v740_v5  ;;  %v730_v7 = vld [vmem:[#allocation5 + $0x28] sm:$0xff]   ;;  %v731_v8 = vld [vmem:[#allocation5 + $0x30] sm:$0xff]   ;;  %v732_v9 = vld [vmem:[#allocation5 + $0x38] sm:$0xff]   ;;  %v404_v15 = vsel %vm402_vm1, %v737_v14, 0  ;;  %s510_s16 = sshll.u32 %s276_s14, 4  ;;  %s898_s21 = smov [#allocation7]   ;;  %s1118_s16 = int_to_ptr.vmem [resolvable:$true] %s510_s16 }
  0x5f   : > { %v733_v10 = vld [vmem:[#allocation5 + $0x40] sm:$0xff]   ;;  %v734_v11 = vld [vmem:[#allocation5 + $0x48] sm:$0xff]   ;;  %v735_v12 = vld [vmem:[#allocation5 + $0x50] sm:$0xff]   ;;  %vm457_vm2 = vcmp.lt.s32.totalorder %v456_v25, 32  ;;  %s803_s26 = scalar_lea.vmem %s1118_s16, 256  ;;  %s807_s24 = sshll.u32 %s898_s21, 4  ;;  %s808_s24 = int_to_ptr.vmem [resolvable:$false] %s807_s24 }
  0x60   : > { %v736_v13 = vld [vmem:[#allocation5 + $0x58] sm:$0xff]   ;;  %v619_v17 = vld [vmem:[%s1169_s2] ss:$0 sm:$0xff]  ;;  %p804_p4 = scmp.ne.s32.totalorder %s1118_s16, %s803_s26  ;;  %s809_s28 = scalar_lea.vmem %s808_s24, 512 }
  0x61   : > { %409 = vmatpush1.bf16.msra.mxu0 %v726_v2  ;;  %v738_v16 = vld [vmem:[%s1089_s27] ss:$8 sps:$4 sm:$0xff]   ;;  %s495_s27 = scalar_lea.sflag [#allocation4], %s1083_s17  ;;  %p810_p12 = scmp.lt.s32.totalorder %s1118_s16, %s808_s24 }
  0x62   : > { %410 = vmatprep.subr.bf16.mxu0 %v897_v0  ;;  %v636_v43 = vld [vmem:[%s1170_s3] ss:$0 sm:$0xff]  ;;  %p805_p6 = pnand %p804_p4, %p1027_p10  ;;  %p811_p11 = scmp.lt.s32.totalorder %s809_s28, %s803_s26 }
  0x63   : > { %v637_v45 = vld [vmem:[%s1171_s4] ss:$0 sm:$0xff] }
  0x64   : > { %p806_p8 = pneg %p805_p6  ;;  %p812_p0 = por %p811_p11, %p810_p12 }
  0x65   : > { %411 = vmatpush1.bf16.msra.mxu0 %v727_v3 }
  0x66   : > { %412 = vmatprep.subr.bf16.mxu0 %v897_v0  ;;  %p813_p5 = pnand %p812_p0, %p806_p8 }
  0x69   : > { %413 = vmatpush1.bf16.msra.mxu0 %v728_v4 }
  0x6a   : > { %414 = vmatprep.subr.bf16.mxu0 %v897_v0 }
  0x6d   : > { %415 = vmatpush1.bf16.msra.mxu0 %v729_v6 }
  0x6e   : > { %416 = vmatprep.subr.bf16.mxu0 %v897_v0 }
  0x71   : > { %417 = vmatpush1.bf16.msra.mxu0 %v730_v7 }
  0x72   : > { %418 = vmatprep.subr.bf16.mxu0 %v897_v0 }
  0x75   : > { %419 = vmatpush1.bf16.msra.mxu0 %v731_v8 }
  0x76   : > { %420 = vmatprep.subr.bf16.mxu0 %v897_v0 }
  0x79   : > { %421 = vmatpush1.bf16.msra.mxu0 %v732_v9 }
  0x7a   : > { %422 = vmatprep.subr.bf16.mxu0 %v897_v0 }
  0x7d   : > { %423 = vmatpush1.bf16.msra.mxu0 %v733_v10 }
  0x7e   : > { %424 = vmatprep.subr.bf16.mxu0 %v897_v0 }
  0x81   : > { %425 = vmatpush1.bf16.msra.mxu0 %v734_v11 }
  0x82   : > { %426 = vmatprep.subr.bf16.mxu0 %v897_v0 }
  0x85   : > { %427 = vmatpush1.bf16.msra.mxu0 %v735_v12 }
  0x86   : > { %428 = vmatprep.subr.bf16.mxu0 %v897_v0 }
  0x89   : > { %429 = vmatpush1.bf16.msra.mxu0 %v736_v13 }
  0x8a   : > { %430 = vmatprep.subr.bf16.mxu0 %v897_v0 }
  0x8d   : > { %431 = vmatpush1.bf16.msra.mxu0 %v404_v15 }
  0x90   : > { %439 = vmatmul.mubr.bf16.vlgmr.msra.gmra.mrb[0].mxu0 %v738_v16 }
 0x163   : > { %v440_v18 = vpop.f32.mrb[0].mxu0 }
 0x164   : > { %v441_v19 = vadd.f32 %v619_v17, %v440_v18  ;;  %v442_v20 = vpop.f32.mrb[1].mxu0 }
 0x165   : > { %v443_v21 = vpop.f32.mrb[2].mxu0 }
 0x166   : > { %v445_v22 = vpop.f32.mrb[3].mxu0  ;;  %449 = vadd.xlane.f32.xlu0 %v441_v19  ;;  %v444_v23 = vadd.f32 %v619_v17, %v443_v21 }
 0x16a   : > { %451 = vadd.xlane.f32.xlu0 %v444_v23 }
 0x1f3   : > { %v450_v26 = vpop.xlane.xlu0 %449 }
 0x1f4   : > { %v453_v27 = vmul.f32 0.03125, %v450_v26 }
 0x1f6   : > { %v458_v28 = vsub.f32 %v441_v19, %v453_v27 }
 0x1f7   : > { %v452_v29 = vpop.xlane.xlu0 %451 }
 0x1f8   : > { %v454_v30 = vmul.f32 0.03125, %v452_v29  ;;  %v460_v31 = vsel %vm457_vm2, %v458_v28, 0.0 }
 0x1f9   : > { %v462_v32 = vmul.f32 %v460_v31, %v460_v31 }
 0x1fa   : > { %v459_v33 = vsub.f32 %v444_v23, %v454_v30 }
 0x1fb   : > { %464 = vadd.xlane.f32.xlu1 %v462_v32 }
 0x1fc   : > { %v461_v34 = vsel %vm457_vm2, %v459_v33, 0.0 }
 0x1fd   : > { %v463_v35 = vmul.f32 %v461_v34, %v461_v34 }
 0x1ff   : > { %466 = vadd.xlane.f32.xlu1 %v463_v35 }
 0x288   : > { %v465_v36 = vpop.xlane.xlu1 %464 }
 0x289   : > { %v468_v37 = vmul.f32 0.03125, %v465_v36 }
 0x28b   : > { %v470_v38 = vadd.f32 1e-05, %v468_v37 }
 0x28c   : > { %v467_v39 = vpop.xlane.xlu1 %466 }
 0x28d   : > { %741 = vrsqrt.f32 %v470_v38  ;;  %v469_v40 = vmul.f32 0.03125, %v467_v39 }
 0x28f   : > { %v471_v41 = vadd.f32 1e-05, %v469_v40 }
 0x291   : > { %743 = vrsqrt.f32 %v471_v41 }
 0x297   : > { %v742_v42 = vpop.eup %741 }
 0x298   : > { %v474_v44 = vmul.f32 %v742_v42, %v460_v31 }
 0x29a   : > { %v482_v46 = vmul.f32 %v636_v43, %v474_v44 }
 0x29b   : > { %v744_v47 = vpop.eup %743 }
 0x29c   : > { %v490_v48 = vadd.f32 %v637_v45, %v482_v46  ;;  %v475_v49 = vmul.f32 %v744_v47, %v461_v34 }
 0x29e   : > { %v483_v50 = vmul.f32 %v636_v43, %v475_v49  ;;  %492 = vst [vmem:[%s276_s14] sm:$0xff] %v490_v48 }
 0x2a0   : > { %v491_v51 = vadd.f32 %v637_v45, %v483_v50 }
 0x2a2   : > { %493 = vst [vmem:[%s276_s14 + $0x8] sm:$0xff] %v491_v51 }
 0x2a3   : > { %816 = shalt.err (!%p813_p5)
}
 0x2a4   : > { %s817_s30 = scalar_lea.hbm %s1116_s7, 256  ;;  %s821_s10 = scalar_lea.hbm %s1172_s5, 512 }
 0x2a5   : > { %p818_p9 = scmp.ne.s32.totalorder %s1116_s7, %s817_s30  ;;  %p822_p3 = scmp.lt.u32.totalorder %s1116_s7, %s1172_s5 }
 0x2a6   : > { %p823_p7 = scmp.lt.u32.totalorder %s821_s10, %s817_s30  ;;  %p825_p4 = scmp.lt.u32.totalorder %s817_s30, %s1116_s7 }
 0x2a7   : > { %p819_p1 = pnand %p818_p9, %p1027_p10 }
 0x2a8   : > { %p824_p13 = por %p823_p7, %p822_p3 }
 0x2a9   : > { %p820_p2 = pneg %p819_p1 }
 0x2aa   : > { %p826_p6 = por %p825_p4, %p824_p13 }
 0x2ac   : > { %p827_p8 = pnand %p826_p6, %p820_p2 }
 0x2ae   : > { %830 = shalt.err (!%p827_p8)
}
 0x2af   : > { %s899_s8 = smov 128   ;;  %s900_s12 = smov 8  }
 0x2b0   : > { %651 = dma.vmem_to_hbm [thread:$0]  (%p1027_p10), %s1118_s16, 256, %s1116_s7, %s495_s27, %s899_s8, %s899_s8, %s900_s12  }
 0x2b1 PF: > { %s525_s26 = sand.u32 1, %s869_s18   ;;  %p1190_p12 = scmp.ne.s32.totalorder %s1180_s29, 0 }
 0x2b2   : > { %p1191_p11 = scmp.ge.s32.totalorder %s889_s23, 2  ;;  %s526_s21 = scalar_lea.sflag [#allocation4], %s525_s26 }
 0x2b4   : > { %p662_p0 = pnand %p1191_p11, %p1190_p12 }
 0x2b6   : > { %864 = dma.done.wait (!%p662_p0), %s526_s21, 256  }
 0x2b7   : > { %866 = vsyncadd (!%p662_p0), %s526_s21, 4294967040  ;;  %s22_s23 = sadd.s32 1, %s889_s23   ;;  %s1192_s18 = smov %s873_s19 }
 0x2b8   : > { %p19_p5 = scmp.ge.s32.totalorder %s22_s23, 4   ;;  %s1193_s19 = smov %s877_s20 }
 0x2b9   : > { %s1194_s20 = smov %s1036_s15  ;;  %s1195_s21 = smov %s885_s22 }
 0x2ba   : > { %s1196_s22 = smov %s1198_s9  ;;  %21 = sbr.rel (!%p19_p5) target bundleno = 7 (0x7), region = 89 }
 0x2c1   :  { %531 = vsyncpa [#allocation3], 1 }
 0x2c2   :  { %533 = vsyncpa [#allocation3 + $0x1], 1 }
 0x2c3   :  { %534 = vsyncpa [#allocation6], 1 }
 0x2c4   :  { %535 = vsyncpa [#allocation4], 1 }
 0x2c5   :  { %537 = vsyncpa [#allocation4 + $0x1], 1 }

</bundles_post_ra>
